<compile_context>
chip_gen: v5e
topology: v5e:2x2
jax: 0.10.0
libtpu: 0.0.40
codegen_flags: <defaults>
</compile_context>

<pallas_src>
import functools
import math

import jax
import jax.numpy as jnp
from jax.experimental import pallas as pl
from jax.experimental.pallas import tpu as pltpu


# ---------------------------------------------------------------------------
# Kernel
# ---------------------------------------------------------------------------
def _make_flash_kernel(scale, has_mask, mask_is_3d):
    def kernel(*refs):
        if has_mask:
            (q_ref, k_ref, v_ref, mask_ref, o_ref,
             q_sc, m_sc, l_sc, acc_sc) = refs
        else:
            (q_ref, k_ref, v_ref, o_ref,
             q_sc, m_sc, l_sc, acc_sc) = refs

        kv = pl.program_id(2)

        @pl.when(kv == 0)
        def _init():
            # Hoist q * scale out of the kv loop: one (TQ, E) multiply per
            # q-tile instead of one per kv step. Scale applied in f32.
            q_sc[...] = (q_ref[0].astype(jnp.float32) * scale).astype(q_sc.dtype)
            m_sc[...] = jnp.full_like(m_sc, -jnp.inf)
            l_sc[...] = jnp.zeros_like(l_sc)
            acc_sc[...] = jnp.zeros_like(acc_sc)

        q = q_sc[...]                                 # (TQ, E), compute dtype (bf16)
        k = k_ref[0]                                  # (TK, E), compute dtype

        # Transpose-free q @ k^T: contract the E axis of both operands; bf16
        # operands on the MXU, f32 accumulation.
        s = jax.lax.dot_general(
            q, k,
            dimension_numbers=(((1,), (1,)), ((), ())),
            preferred_element_type=jnp.float32)       # (TQ, TK) f32

        if has_mask:
            m_tile = mask_ref[0] if mask_is_3d else mask_ref[...]
            s = s + m_tile.astype(jnp.float32)        # additive mask (module contract)

        # Online (flash) softmax update, all in f32.
        m_prev = m_sc[...]                            # (TQ, 1)
        m_new = jnp.maximum(m_prev, jnp.max(s, axis=-1, keepdims=True))
        if has_mask:
            # Guard against fully-masked KV tiles: if a whole row is -inf so
            # far, exp(-inf - -inf) would produce NaN; force alpha = p = 0.
            row_dead = m_new == -jnp.inf              # (TQ, 1)
            alpha = jnp.where(row_dead, 0.0, jnp.exp(m_prev - m_new))
            p = jnp.where(row_dead, 0.0, jnp.exp(s - m_new))
        else:
            alpha = jnp.exp(m_prev - m_new)
            p = jnp.exp(s - m_new)                    # (TQ, TK) f32

        l_sc[...] = alpha * l_sc[...] + jnp.sum(p, axis=-1, keepdims=True)
        acc_sc[...] = alpha * acc_sc[...] + jnp.dot(
            p.astype(v_ref.dtype), v_ref[0],          # bf16 PV matmul on the MXU
            preferred_element_type=jnp.float32)       # (TQ, E) f32
        m_sc[...] = m_new

        @pl.when(kv == pl.num_programs(2) - 1)
        def _finalize():
            # Normalize once per q-tile (EUP approx reciprocal; ~free next to MXU).
            inv_l = pl.reciprocal(l_sc[...], approx=True)
            o_ref[0] = (acc_sc[...] * inv_l).astype(o_ref.dtype)

    return kernel


# ---------------------------------------------------------------------------
# Generation-aware tile / VMEM budgeting
# ---------------------------------------------------------------------------
def _round_up(n, m):
    return ((n + m - 1) // m) * m


def _vmem_capacity_bytes():
    try:
        return int(pltpu.get_tpu_info().vmem_capacity_bytes)
    except Exception:
        # Conservative default (v7x has 64 MiB per TensorCore).
        return 64 * 1024 * 1024


def _vmem_estimate(TQ, TK, E, in_bytes, out_bytes, mask_bytes, has_mask):
    """Padded (lane=128 / sublane=8) VMEM estimate incl. double-buffering."""
    Ep = _round_up(E, 128)
    TQp = _round_up(TQ, 8)
    TKp = _round_up(TK, 8)
    q_buf = 2 * TQp * Ep * in_bytes
    k_buf = 2 * TKp * Ep * in_bytes
    v_buf = 2 * TKp * Ep * in_bytes
    o_buf = 2 * TQp * Ep * out_bytes
    m_buf = 2 * TQp * _round_up(TK, 128) * mask_bytes if has_mask else 0
    # scratches: scaled-q + f32 accumulator + m/l columns
    sc = TQp * Ep * in_bytes + TQp * Ep * 4 + 2 * TQp * 128 * 4
    return q_buf + k_buf + v_buf + o_buf + m_buf + sc


def _select_tiles(L, E, B, in_bytes, out_bytes, mask_bytes, has_mask, budget):
    # Larger defaults than before: per-grid-step overhead and DMA setup dominate
    # at small E, and bigger TQ cuts the K/V HBM re-read factor (= L/TQ).
    tq_c = [t for t in (512, 256, 128, 64, 32, 16, 8) if t <= L and L % t == 0] or [L]
    # TK candidates are multiples of 256 (v6e/v7x have a 2x256^2 MXU); 128 kept
    # only as a fallback for sequence lengths that don't divide by 256.
    tk_c = [t for t in (2048, 1024, 512, 256, 128) if t <= L and L % t == 0] or [L]
    for TQ in tq_c:
        # v7x megacore: keep the parallel grid extent B * (L // TQ) >= 2 when a
        # smaller q-tile can provide it, so the second TensorCore isn't idle.
        if B * (L // TQ) < 2 and TQ != tq_c[-1]:
            continue
        for TK in tk_c:
            if _vmem_estimate(TQ, TK, E, in_bytes, out_bytes,
                              mask_bytes, has_mask) <= budget:
                return TQ, TK
    return tq_c[-1], tk_c[-1]


# ---------------------------------------------------------------------------
# Wrapper
# ---------------------------------------------------------------------------
def rel_scale_dot_product_attention(q, k, v, attn_mask=None, *,
                                    dropout_p=0.0, tq=None, tk=None,
                                    use_bf16_mxu=True):
    """Pallas TPU forward of relScaleDotProductAttention (eval mode).

    q, k, v: (B, L, E) arrays.
    attn_mask: optional additive mask of shape (L, L), (1, L, L) or (B, L, L).
    use_bf16_mxu: feed the MXU bf16 operands (f32 accumulate / f32 softmax).
    For multi-head use, fuse heads so E >= 128 at the call boundary.
    Returns: (B, L, E) in the input dtype.
    """
    B, L, E = q.shape
    assert k.shape == (B, L, E) and v.shape == (B, L, E)
    out_dtype = q.dtype

    # TODO(synk): relDropout (training mode, dropout_p > 0) not implemented;
    # this kernel is the eval-mode forward (dropout is identity).
    del dropout_p

    # MXU dtype: bf16 operands give ~4x matmul throughput on every generation;
    # accumulation and softmax stay f32.
    compute_dtype = jnp.bfloat16 if (use_bf16_mxu and q.dtype == jnp.float32) else q.dtype
    if compute_dtype != q.dtype:
        q = q.astype(compute_dtype)
        k = k.astype(compute_dtype)
        v = v.astype(compute_dtype)
    in_bytes = jnp.dtype(compute_dtype).itemsize
    out_bytes = jnp.dtype(out_dtype).itemsize

    # Mask preprocessing (no (B, L, L) broadcast is ever materialized).
    has_mask = attn_mask is not None
    mask = None
    mask_is_3d = False
    mask_bytes = 0
    if has_mask:
        mask = attn_mask
        if mask.dtype == jnp.bool_:
            # Module contract is literally `attn + attn_mask`; match torch's
            # bool->float promotion. (Not a keep/-inf select.)
            mask = mask.astype(jnp.float32)
        if mask.ndim == 3 and mask.shape[0] == 1:
            mask = mask[0]
        mask_is_3d = mask.ndim == 3
        if mask_is_3d:
            assert mask.shape == (B, L, L)
        else:
            assert mask.shape == (L, L)
        # Stream the mask at reduced precision on the bf16 path: mask DMA is
        # the dominant HBM traffic for small E; bf16 halves it. -inf survives.
        if compute_dtype == jnp.bfloat16:
            mask = mask.astype(jnp.bfloat16)
        mask_bytes = jnp.dtype(mask.dtype).itemsize

    # Generation-aware VMEM budget: ~80% of physical capacity as the Mosaic
    # limit (≈50 MiB on v7x's 64 MiB, ≈100 MiB on v5e/v6e's 128 MiB), and tiles
    # sized against ~70% of that limit for pipelining headroom.
    vmem_cap = _vmem_capacity_bytes()
    vmem_limit = int(vmem_cap * 0.8)
    tile_budget = int(vmem_limit * 0.7)

    if tq is None or tk is None:
        TQ, TK = _select_tiles(L, E, B, in_bytes, out_bytes, mask_bytes,
                               has_mask, tile_budget)
        if tq is not None:
            TQ = tq
        if tk is not None:
            TK = tk
    else:
        TQ, TK = tq, tk
    assert L % TQ == 0 and L % TK == 0, "tile sizes must divide L"

    scale = 1.0 / math.sqrt(E)
    grid = (B, L // TQ, L // TK)

    in_specs = [
        pl.BlockSpec((1, TQ, E), lambda b, qi, kj: (b, qi, 0)),   # Q: fixed over kv
        pl.BlockSpec((1, TK, E), lambda b, qi, kj: (b, kj, 0)),   # K
        pl.BlockSpec((1, TK, E), lambda b, qi, kj: (b, kj, 0)),   # V
    ]
    inputs = [q, k, v]
    if has_mask:
        if mask_is_3d:
            in_specs.append(pl.BlockSpec((1, TQ, TK), lambda b, qi, kj: (b, qi, kj)))
        else:
            # 2-D mask stays 2-D in HBM; index_map ignores the batch index.
            in_specs.append(pl.BlockSpec((TQ, TK), lambda b, qi, kj: (qi, kj)))
        inputs.append(mask)

    # Output block index ignores kv -> accumulator-resident across the
    # reduction axis; written only on the last kv step.
    out_spec = pl.BlockSpec((1, TQ, E), lambda b, qi, kj: (b, qi, 0))

    kernel = _make_flash_kernel(scale, has_mask, mask_is_3d)

    return pl.pallas_call(
        kernel,
        out_shape=jax.ShapeDtypeStruct((B, L, E), out_dtype),
        grid_spec=pltpu.PrefetchScalarGridSpec(
            num_scalar_prefetch=0,
            grid=grid,
            in_specs=in_specs,
            out_specs=out_spec,
            scratch_shapes=[
                pltpu.VMEM((TQ, E), compute_dtype),   # scaled q (hoisted)
                pltpu.VMEM((TQ, 1), jnp.float32),     # running max  m
                pltpu.VMEM((TQ, 1), jnp.float32),     # running sum  l
                pltpu.VMEM((TQ, E), jnp.float32),     # f32 accumulator
            ],
        ),
        compiler_params=pltpu.CompilerParams(
            dimension_semantics=("parallel", "parallel", "arbitrary"),
            vmem_limit_bytes=vmem_limit,
        ),
    )(*inputs)


# ---------------------------------------------------------------------------
# Reference & self-test
# ---------------------------------------------------------------------------
def _reference(q, k, v, attn_mask=None):
    E = q.shape[-1]
    qs = q / math.sqrt(E)
    attn = jnp.einsum("ble,bme->blm", qs, k)
    if attn_mask is not None:
        attn = attn + attn_mask
    attn = jax.nn.softmax(attn, axis=-1)
    return jnp.einsum("blm,bme->ble", attn, v)


if __name__ == "__main__":
    B, L, E = 2, 8, 32  # small shapes consistent with (batch, seq, hidden)

    key = jax.random.PRNGKey(0)
    kq, kk, kv_, km = jax.random.split(key, 4)
    q = jax.random.normal(kq, (B, L, E), dtype=jnp.float32)
    k = jax.random.normal(kk, (B, L, E), dtype=jnp.float32)
    v = jax.random.normal(kv_, (B, L, E), dtype=jnp.float32)
    attn_mask = 0.1 * jax.random.normal(km, (L, L), dtype=jnp.float32)

    # 1) masked path, default bf16-MXU operands (f32 accumulate / f32 softmax)
    out = jax.block_until_ready(rel_scale_dot_product_attention(q, k, v, attn_mask))
    ref = _reference(q, k, v, attn_mask)
    assert out.shape == (B, L, E) and out.dtype == q.dtype
    assert jnp.allclose(out, ref, atol=2e-2, rtol=2e-2), "mismatch (masked, bf16 MXU)"

    # 2) masked path, full-f32 MXU (tight tolerance vs reference)
    out_f32 = jax.block_until_ready(
        rel_scale_dot_product_attention(q, k, v, attn_mask, use_bf16_mxu=False))
    assert jnp.allclose(out_f32, ref, atol=2e-3, rtol=2e-3), "mismatch (masked, f32 MXU)"

    # 3) no-mask path (separate kernel variant, no mask input/DMA at all)
    out_nm = jax.block_until_ready(rel_scale_dot_product_attention(q, k, v))
    ref_nm = _reference(q, k, v, None)
    assert jnp.allclose(out_nm, ref_nm, atol=2e-2, rtol=2e-2), "mismatch (no mask)"

    # 4) tiled path with auto-selected (generation-aware) tiles at L=256
    L2, E2 = 256, 32
    k2q, k2k, k2v, k2m = jax.random.split(jax.random.PRNGKey(1), 4)
    q2 = jax.random.normal(k2q, (B, L2, E2), dtype=jnp.float32)
    k2 = jax.random.normal(k2k, (B, L2, E2), dtype=jnp.float32)
    v2 = jax.random.normal(k2v, (B, L2, E2), dtype=jnp.float32)
    m2 = 0.1 * jax.random.normal(k2m, (L2, L2), dtype=jnp.float32)
    out2 = jax.block_until_ready(rel_scale_dot_product_attention(q2, k2, v2, m2))
    ref2 = _reference(q2, k2, v2, m2)
    assert jnp.allclose(out2, ref2, atol=2e-2, rtol=2e-2), "mismatch (tiled)"

    # 5) -inf mask with fully-masked KV tiles (exercises the NaN guard):
    #    anti-causal mask -> for the second q-tile the first KV tile is all -inf.
    rows = jnp.arange(L2)[:, None]
    cols = jnp.arange(L2)[None, :]
    inf_mask = jnp.where(cols >= rows, 0.0, -jnp.inf).astype(jnp.float32)
    out3 = jax.block_until_ready(
        rel_scale_dot_product_attention(q2, k2, v2, inf_mask, tq=128, tk=128))
    ref3 = _reference(q2, k2, v2, inf_mask)
    assert not jnp.any(jnp.isnan(out3)), "NaN from fully-masked KV tile"
    assert jnp.allclose(out3, ref3, atol=2e-2, rtol=2e-2), "mismatch (-inf mask)"

    print("KERNEL_OK")
</pallas_src>

<mosaic_0001>
module attributes {stable_mosaic.version = 11 : i64} {
  func.func @kernel(%arg0: i32, %arg1: i32, %arg2: i32, %arg3: memref<1x8x32xbf16, #tpu.memory_space<vmem>>, %arg4: memref<1x8x32xbf16, #tpu.memory_space<vmem>>, %arg5: memref<1x8x32xbf16, #tpu.memory_space<vmem>>, %arg6: memref<8x8xbf16, #tpu.memory_space<vmem>>, %arg7: memref<1x8x32xf32, #tpu.memory_space<vmem>>, %arg8: memref<8x32xbf16, #tpu.memory_space<vmem>>, %arg9: memref<8x1xf32, #tpu.memory_space<vmem>>, %arg10: memref<8x1xf32, #tpu.memory_space<vmem>>, %arg11: memref<8x32xf32, #tpu.memory_space<vmem>>) attributes {dimension_semantics = [#tpu.dimension_semantics<parallel>, #tpu.dimension_semantics<parallel>, #tpu.dimension_semantics<arbitrary>], iteration_bounds = array<i64: 2, 1, 1>, scalar_prefetch = 0 : i64, scratch_operands = 4 : i64, tpu.core_type = #tpu.core_type<tc>, window_params = [{transform_indices = @transform_0, window_bounds = array<i64: 1, 8, 32>}, {transform_indices = @transform_1, window_bounds = array<i64: 1, 8, 32>}, {transform_indices = @transform_2, window_bounds = array<i64: 1, 8, 32>}, {transform_indices = @transform_3, window_bounds = array<i64: 8, 8>}, {transform_indices = @transform_4, window_bounds = array<i64: 1, 8, 32>}]} {
    %c0_i32 = arith.constant 0 : i32
    %0 = arith.cmpi eq, %arg2, %c0_i32 : i32
    %1 = arith.extui %0 : i1 to i32
    %c0_i32_0 = arith.constant 0 : i32
    %2 = arith.cmpi ne, %1, %c0_i32_0 : i32
    scf.if %2 {
      %c0_30 = arith.constant 0 : index
      %c0_31 = arith.constant 0 : index
      %c0_32 = arith.constant 0 : index
      %46 = vector.load %arg3[%c0_30, %c0_31, %c0_32] : memref<1x8x32xbf16, #tpu.memory_space<vmem>>, vector<1x8x32xbf16>
      %47 = vector.shape_cast %46 : vector<1x8x32xbf16> to vector<8x32xbf16>
      %48 = arith.extf %47 : vector<8x32xbf16> to vector<8x32xf32>
      %cst_33 = arith.constant 0.176776692 : f32
      %49 = vector.broadcast %cst_33 : f32 to vector<8x32xf32>
      %50 = arith.mulf %48, %49 : vector<8x32xf32>
      %51 = arith.truncf %50 : vector<8x32xf32> to vector<8x32xbf16>
      %c0_34 = arith.constant 0 : index
      %c0_35 = arith.constant 0 : index
      %52 = vector.load %arg8[%c0_34, %c0_35] : memref<8x32xbf16, #tpu.memory_space<vmem>>, vector<8x32xbf16>
      tpu.vector_store %arg8[%c0_34, %c0_35], %51 {strides = array<i32>} : memref<8x32xbf16, #tpu.memory_space<vmem>>, vector<8x32xbf16>,
      %cst_36 = arith.constant 0xFF800000 : f32
      %53 = vector.broadcast %cst_36 : f32 to vector<8x1xf32>
      %c0_37 = arith.constant 0 : index
      %c0_38 = arith.constant 0 : index
      %54 = vector.load %arg9[%c0_37, %c0_38] : memref<8x1xf32, #tpu.memory_space<vmem>>, vector<8x1xf32>
      tpu.vector_store %arg9[%c0_37, %c0_38], %53 {strides = array<i32>} : memref<8x1xf32, #tpu.memory_space<vmem>>, vector<8x1xf32>,
      %cst_39 = arith.constant 0.000000e+00 : f32
      %55 = vector.broadcast %cst_39 : f32 to vector<8x1xf32>
      %c0_40 = arith.constant 0 : index
      %c0_41 = arith.constant 0 : index
      %56 = vector.load %arg10[%c0_40, %c0_41] : memref<8x1xf32, #tpu.memory_space<vmem>>, vector<8x1xf32>
      tpu.vector_store %arg10[%c0_40, %c0_41], %55 {strides = array<i32>} : memref<8x1xf32, #tpu.memory_space<vmem>>, vector<8x1xf32>,
      %cst_42 = arith.constant 0.000000e+00 : f32
      %57 = vector.broadcast %cst_42 : f32 to vector<8x32xf32>
      %c0_43 = arith.constant 0 : index
      %c0_44 = arith.constant 0 : index
      %58 = vector.load %arg11[%c0_43, %c0_44] : memref<8x32xf32, #tpu.memory_space<vmem>>, vector<8x32xf32>
      tpu.vector_store %arg11[%c0_43, %c0_44], %57 {strides = array<i32>} : memref<8x32xf32, #tpu.memory_space<vmem>>, vector<8x32xf32>,
    } else {
    }
    %c0 = arith.constant 0 : index
    %c0_1 = arith.constant 0 : index
    %3 = vector.load %arg8[%c0, %c0_1] : memref<8x32xbf16, #tpu.memory_space<vmem>>, vector<8x32xbf16>
    %c0_2 = arith.constant 0 : index
    %c0_3 = arith.constant 0 : index
    %c0_4 = arith.constant 0 : index
    %4 = vector.load %arg4[%c0_2, %c0_3, %c0_4] : memref<1x8x32xbf16, #tpu.memory_space<vmem>>, vector<1x8x32xbf16>
    %5 = vector.shape_cast %4 : vector<1x8x32xbf16> to vector<8x32xbf16>
    %cst = arith.constant dense<0.000000e+00> : vector<8x8xf32>
    %6 = tpu.matmul %3, %5, %cst {dimension_numbers = #tpu.dot_dimension_numbers<[1], [1], [0], [0], [0, 0, 1, 0], [], []>} : vector<8x32xbf16>, vector<8x32xbf16>, vector<8x8xf32> -> vector<8x8xf32>
    %c0_5 = arith.constant 0 : index
    %c0_6 = arith.constant 0 : index
    %7 = vector.load %arg6[%c0_5, %c0_6] : memref<8x8xbf16, #tpu.memory_space<vmem>>, vector<8x8xbf16>
    %8 = arith.extf %7 : vector<8x8xbf16> to vector<8x8xf32>
    %9 = arith.addf %6, %8 : vector<8x8xf32>
    %c0_7 = arith.constant 0 : index
    %c0_8 = arith.constant 0 : index
    %10 = vector.load %arg9[%c0_7, %c0_8] : memref<8x1xf32, #tpu.memory_space<vmem>>, vector<8x1xf32>
    %cst_9 = arith.constant dense<0xFF800000> : vector<8xf32>
    %11 = vector.multi_reduction <maximumf>, %9, %cst_9 [1] : vector<8x8xf32> to vector<8xf32>
    %12 = vector.shape_cast %11 : vector<8xf32> to vector<8x1xf32>
    %13 = arith.maximumf %10, %12 : vector<8x1xf32>
    %cst_10 = arith.constant 0xFF800000 : f32
    %14 = vector.broadcast %cst_10 : f32 to vector<8x1xf32>
    %15 = arith.cmpf oeq, %13, %14 : vector<8x1xf32>
    %16 = arith.subf %10, %13 : vector<8x1xf32>
    %17 = math.exp %16 : vector<8x1xf32>
    %cst_11 = arith.constant 0.000000e+00 : f32
    %18 = vector.broadcast %cst_11 : f32 to vector<8x1xf32>
    %19 = arith.select %15, %18, %17 : vector<8x1xi1>, vector<8x1xf32>
    %20 = vector.broadcast %13 : vector<8x1xf32> to vector<8x8xf32>
    %21 = arith.subf %9, %20 : vector<8x8xf32>
    %22 = math.exp %21 : vector<8x8xf32>
    %cst_12 = arith.constant 0.000000e+00 : f32
    %23 = vector.shape_cast %15 : vector<8x1xi1> to vector<8x1xi1>
    %24 = vector.broadcast %23 : vector<8x1xi1> to vector<8x8xi1>
    %25 = vector.broadcast %cst_12 : f32 to vector<8x8xf32>
    %26 = arith.select %24, %25, %22 : vector<8x8xi1>, vector<8x8xf32>
    %c0_13 = arith.constant 0 : index
    %c0_14 = arith.constant 0 : index
    %27 = vector.load %arg10[%c0_13, %c0_14] : memref<8x1xf32, #tpu.memory_space<vmem>>, vector<8x1xf32>
    %28 = arith.mulf %19, %27 : vector<8x1xf32>
    %cst_15 = arith.constant dense<0.000000e+00> : vector<8xf32>
    %29 = vector.multi_reduction <add>, %26, %cst_15 [1] : vector<8x8xf32> to vector<8xf32>
    %30 = vector.shape_cast %29 : vector<8xf32> to vector<8x1xf32>
    %31 = arith.addf %28, %30 : vector<8x1xf32>
    %c0_16 = arith.constant 0 : index
    %c0_17 = arith.constant 0 : index
    %32 = vector.load %arg10[%c0_16, %c0_17] : memref<8x1xf32, #tpu.memory_space<vmem>>, vector<8x1xf32>
    tpu.vector_store %arg10[%c0_16, %c0_17], %31 {strides = array<i32>} : memref<8x1xf32, #tpu.memory_space<vmem>>, vector<8x1xf32>,
    %c0_18 = arith.constant 0 : index
    %c0_19 = arith.constant 0 : index
    %33 = vector.load %arg11[%c0_18, %c0_19] : memref<8x32xf32, #tpu.memory_space<vmem>>, vector<8x32xf32>
    %34 = vector.broadcast %19 : vector<8x1xf32> to vector<8x32xf32>
    %35 = arith.mulf %34, %33 : vector<8x32xf32>
    %36 = arith.truncf %26 : vector<8x8xf32> to vector<8x8xbf16>
    %c0_20 = arith.constant 0 : index
    %c0_21 = arith.constant 0 : index
    %c0_22 = arith.constant 0 : index
    %37 = vector.load %arg5[%c0_20, %c0_21, %c0_22] : memref<1x8x32xbf16, #tpu.memory_space<vmem>>, vector<1x8x32xbf16>
    %38 = vector.shape_cast %37 : vector<1x8x32xbf16> to vector<8x32xbf16>
    %cst_23 = arith.constant dense<0.000000e+00> : vector<8x32xf32>
    %39 = tpu.matmul %36, %38, %cst_23 {dimension_numbers = #tpu.dot_dimension_numbers<[1], [0], [0], [1], [0, 0, 1, 1], [], []>} : vector<8x8xbf16>, vector<8x32xbf16>, vector<8x32xf32> -> vector<8x32xf32>
    %40 = arith.addf %35, %39 : vector<8x32xf32>
    %c0_24 = arith.constant 0 : index
    %c0_25 = arith.constant 0 : index
    %41 = vector.load %arg11[%c0_24, %c0_25] : memref<8x32xf32, #tpu.memory_space<vmem>>, vector<8x32xf32>
    tpu.vector_store %arg11[%c0_24, %c0_25], %40 {strides = array<i32>} : memref<8x32xf32, #tpu.memory_space<vmem>>, vector<8x32xf32>,
    %c0_26 = arith.constant 0 : index
    %c0_27 = arith.constant 0 : index
    %42 = vector.load %arg9[%c0_26, %c0_27] : memref<8x1xf32, #tpu.memory_space<vmem>>, vector<8x1xf32>
    tpu.vector_store %arg9[%c0_26, %c0_27], %13 {strides = array<i32>} : memref<8x1xf32, #tpu.memory_space<vmem>>, vector<8x1xf32>,
    %c0_i32_28 = arith.constant 0 : i32
    %43 = arith.cmpi eq, %arg2, %c0_i32_28 : i32
    %44 = arith.extui %43 : i1 to i32
    %c0_i32_29 = arith.constant 0 : i32
    %45 = arith.cmpi ne, %44, %c0_i32_29 : i32
    scf.if %45 {
      %c0_30 = arith.constant 0 : index
      %c0_31 = arith.constant 0 : index
      %46 = vector.load %arg10[%c0_30, %c0_31] : memref<8x1xf32, #tpu.memory_space<vmem>>, vector<8x1xf32>
      %47 = tpu.reciprocal %46 {approx = true} : vector<8x1xf32> -> vector<8x1xf32>
      %c0_32 = arith.constant 0 : index
      %c0_33 = arith.constant 0 : index
      %48 = vector.load %arg11[%c0_32, %c0_33] : memref<8x32xf32, #tpu.memory_space<vmem>>, vector<8x32xf32>
      %49 = vector.broadcast %47 : vector<8x1xf32> to vector<8x32xf32>
      %50 = arith.mulf %48, %49 : vector<8x32xf32>
      %c0_34 = arith.constant 0 : index
      %c0_35 = arith.constant 0 : index
      %c0_36 = arith.constant 0 : index
      %51 = vector.load %arg7[%c0_34, %c0_35, %c0_36] : memref<1x8x32xf32, #tpu.memory_space<vmem>>, vector<1x8x32xf32>
      %52 = vector.shape_cast %51 : vector<1x8x32xf32> to vector<8x32xf32>
      %53 = vector.shape_cast %50 : vector<8x32xf32> to vector<1x8x32xf32>
      tpu.vector_store %arg7[%c0_34, %c0_35, %c0_36], %53 {strides = array<i32>} : memref<1x8x32xf32, #tpu.memory_space<vmem>>, vector<1x8x32xf32>,
    } else {
    }
    return
  }
  func.func @transform_0(%arg0: i32, %arg1: i32, %arg2: i32) -> (i32, i32, i32) {
    %c0_i32 = arith.constant 0 : i32
    %c0_i32_0 = arith.constant 0 : i32
    return %arg0, %arg1, %c0_i32 : i32, i32, i32
  }
  func.func @transform_1(%arg0: i32, %arg1: i32, %arg2: i32) -> (i32, i32, i32) {
    %c0_i32 = arith.constant 0 : i32
    %c0_i32_0 = arith.constant 0 : i32
    return %arg0, %arg2, %c0_i32 : i32, i32, i32
  }
  func.func @transform_2(%arg0: i32, %arg1: i32, %arg2: i32) -> (i32, i32, i32) {
    %c0_i32 = arith.constant 0 : i32
    %c0_i32_0 = arith.constant 0 : i32
    return %arg0, %arg2, %c0_i32 : i32, i32, i32
  }
  func.func @transform_3(%arg0: i32, %arg1: i32, %arg2: i32) -> (i32, i32) {
    %c0_i32 = arith.constant 0 : i32
    return %arg1, %arg2 : i32, i32
  }
  func.func @transform_4(%arg0: i32, %arg1: i32, %arg2: i32) -> (i32, i32, i32) {
    %c0_i32 = arith.constant 0 : i32
    %c0_i32_0 = arith.constant 0 : i32
    return %arg0, %arg1, %c0_i32 : i32, i32, i32
  }
}

</mosaic_0001>

<bundles_post_ra>
// kernel: tpu_custom_call.1
= control target key start
LH: loop header
LB: loop body
LE: loop exit
PB: predicated region body
PF: predicated region fallthrough
CT: control target
= control target key end

     0   :  { %s1183_s0 = inlined_call_operand.hbm [shape: bf16[2,8,32], index: 0, kind: input, shape index: {}]   ;;  %s1184_s1 = inlined_call_operand.hbm [shape: bf16[2,8,32], index: 1, kind: input, shape index: {}]   ;;  %s1185_s2 = inlined_call_operand.hbm [shape: bf16[2,8,32], index: 2, kind: input, shape index: {}]   ;;  %s1186_s3 = inlined_call_operand.hbm [shape: bf16[8,8], index: 3, kind: input, shape index: {}]   ;;  %s1187_s4 = inlined_call_operand.hbm [shape: f32[2,8,32], index: 4, kind: output, shape index: {}]  }
   0x1   :  { %1193 = sst [smem:[#allocation23_spill]] %s1184_s1 }
   0x2   :  { %1194 = sst [smem:[#allocation24_spill]] %s1186_s3 }
   0x3   :  { %9 = vsyncpa [#allocation7], 0 }
   0x4   :  { %11 = vsyncpa [#allocation7 + $0x1], 0 }
   0x5   :  { %12 = vsyncpa [#allocation10], 0 }
   0x6   :  { %14 = vsyncpa [#allocation10 + $0x1], 0 }
   0x7   :  { %15 = vsyncpa [#allocation13], 0 }
   0x8   :  { %16 = vsyncpa [#allocation8], 0 }
   0x9   :  { %18 = vsyncpa [#allocation8 + $0x1], 0  ;;  %s980_s15 = smov 0   ;;  %s982_s16 = smov 0  }
   0xa   :  { %s984_s17 = smov 0   ;;  %s986_s18 = smov 0  }
   0xb   :  { %s988_s19 = smov 0   ;;  %s990_s20 = smov 0  }
   0xc LB: > { %1195 = sst [smem:[#allocation19_spill]] %s945_s19  ;;  %s43_s21 = sadd.s32 1, %s945_s19  ;;  %s949_s20 = sphi %s990_s20, %s24_s20   ;;  %s945_s19 = sphi %s988_s19, %s1214_s19   ;;  %s941_s18 = sphi %s986_s18, %s1209_s18   ;;  %s937_s17 = sphi %s984_s17, %s1213_s17   ;;  %s933_s16 = sphi %s982_s16, %s1212_s16   ;;  %s929_s15 = sphi %s980_s15, %s1211_s15  }
   0xd   : > { %1196 = sst [smem:[#allocation20_spill]] %s949_s20  ;;  %s52_s22 = sadd.s32 1, %s937_s17 }
   0xe   : > { %p45_p0 = scmp.ge.s32.totalorder %s43_s21, 2  ;;  %p59_p1 = scmp.ne.s32.totalorder %s937_s17, %s933_s16 }
   0xf   : > { %p60_p2 = scmp.eq.s32.totalorder %s949_s20, 0  ;;  %p625_p3 = scmp.ge.s32.totalorder %s949_s20, 2 }
  0x10   : > { %s1216_s21 = smov (%p45_p0, %s43_s21), 0  ;;  %p675_p5 = scmp.lt.s32.totalorder %s949_s20, 2 }
  0x11   : > { %1197 = sst [smem:[#allocation21_spill]] %s1216_s21  ;;  %p61_p4 = por %p60_p2, %p59_p1 }
  0x12   : > { %s47_s23 = ssub.s32 %s945_s19, %s1216_s21  ;;  %s1188_s24 = sand.u32 1, %s937_s17  }
  0x13   : > { %p50_p6 = scmp.eq.s32.totalorder %s47_s23, 0  ;;  %s1027_s25 = sshll.u32 %s1188_s24, 2 }
  0x14   : > { %s1030_s26 = sshll.u32 %s945_s19, 2  ;;  %p1032_p7 = pnand %p675_p5, %p61_p4 }
  0x15   : > { %s1037_s28 = scalar_select %p50_p6, %s937_s17, %s52_s22  }
  0x16   : > { %s236_s29 = sand.u32 1, %s949_s20   ;;  %s1200_s1 = sld [smem:[#allocation23_spill]] }
  0x17   : > { %1199 = sst [smem:[#allocation22_spill]] %s1037_s28  ;;  %s240_s7 = scalar_lea.vmem [#allocation9], %s1027_s25 }
  0x18   : > { %s249_s8 = sshll.u32 %s240_s7, 4  ;;  %s1045_s10 = scalar_lea.sflag [#allocation10], %s236_s29  ;;  %s250_s8 = int_to_ptr.vmem [resolvable:$true] %s249_s8 }
  0x19   : > { %s1051_s11 = sadd.s32 4294967295, %s949_s20   ;;  %s622_s12 = sadd.s32 4294967294, %s949_s20  }
  0x1a   : > { %p65_p8 = scmp.ne.s32.totalorder %s933_s16, %s929_s15  ;;  %p66_p9 = scmp.eq.s32.totalorder %s1051_s11, 0 }
  0x1b   : > { %p175_p10 = scmp.eq.s32.totalorder %s1051_s11, 1  ;;  %p181_p11 = scmp.eq.s32.totalorder %s622_s12, 1 }
  0x1c   : > { %s245_s6 = scalar_lea.hbm %s1200_s1, %s1030_s26  ;;  %p623_p12 = scmp.ge.s32.totalorder %s949_s20, 1 }
  0x1d   : > { %s247_s9 = sshll.u32 %s245_s6, 4  ;;  %p1061_p13 = por %p66_p9, %p65_p8  ;;  %s248_s9 = int_to_ptr.hbm [resolvable:$true] %s247_s9 }
  0x1e   : > { %666 = dma.hbm_to_vmem [thread:$0]  (!%p1032_p7), %s248_s9, 64, %s250_s8, %s1045_s10  }
  0x1f   : > { %p1068_p0 = por %p175_p10, %p59_p1  ;;  %p1072_p2 = por %p181_p11, %p65_p8 }
  0x20   : > { %p188_p4 = scmp.lt.s32.totalorder %s949_s20, 3  ;;  %s1204_s3 = sld [smem:[#allocation24_spill]] }
  0x21   : > { %s951_s6 = smov [#allocation12]   ;;  %s225_s12 = scalar_lea.hbm %s1183_s0, %s1030_s26 }
  0x22   : > { %p1080_p5 = pnand %p623_p12, %p188_p4  ;;  %s205_s7 = sshll.u32 %s951_s6, 4  ;;  %s206_s7 = int_to_ptr.vmem [resolvable:$true] %s205_s7 }
  0x23   : > { %s227_s23 = sshll.u32 %s225_s12, 4  ;;  %s220_s29 = scalar_lea.vmem [#allocation6], %s1027_s25  ;;  %s228_s23 = int_to_ptr.hbm [resolvable:$true] %s227_s23 }
  0x24   : > { %p656_p1 = pneg %p1080_p5  ;;  %s229_s24 = sshll.u32 %s220_s29, 4  ;;  %s230_s24 = int_to_ptr.vmem [resolvable:$true] %s229_s24 }
  0x25   : > { %s1206_s1 = sand.u32 1, %s937_s17   ;;  %s265_s19 = scalar_lea.hbm %s1185_s2, %s1030_s26 }
  0x26   : > { %s203_s30 = sshll.u32 %s1204_s3, 4  ;;  %p657_p6 = pnand %p656_p1, %p66_p9  ;;  %s204_s30 = int_to_ptr.hbm [resolvable:$true] %s203_s30 }
  0x27   : > { %s217_s3 = scalar_lea.sflag [#allocation7], %s1206_s1  ;;  %s260_s28 = scalar_lea.vmem [#allocation11], %s1027_s25 }
  0x28   : > { %659 = dma.hbm_to_vmem [thread:$0]  (!%p657_p6), %s204_s30, 64, %s206_s7, [#allocation13]  }
  0x29   : > { %663 = dma.hbm_to_vmem [thread:$0]  (!%p1032_p7), %s228_s23, 64, %s230_s24, %s217_s3  }
  0x2a   : > { %s269_s20 = sshll.u32 %s260_s28, 4  ;;  %s267_s8 = sshll.u32 %s265_s19, 4  ;;  %s270_s20 = int_to_ptr.vmem [resolvable:$true] %s269_s20  ;;  %s268_s8 = int_to_ptr.hbm [resolvable:$true] %s267_s8 }
  0x2b   : > { %669 = dma.hbm_to_vmem [thread:$0]  (!%p1032_p7), %s268_s8, 64, %s270_s20, %s1045_s10  }
  0x2c   : > { %278 = sbr.rel (%p1080_p5) target bundleno = 675 (0x2a3), region = 36  ;;  %s1108_s30 = sand.u32 (!%p1080_p5), 1, %s933_s16  }
  0x2d   : > { %s1111_s1 = sshll.u32 (!%p1080_p5), %s1108_s30, 2  ;;  %s281_s3 = scalar_lea.sflag (!%p1080_p5), [#allocation7], %s1108_s30 }
  0x2e   : > { %s284_s21 = scalar_lea.vmem (!%p1080_p5), [#allocation6], %s1111_s1 }
  0x31   : > { %912 = dma.done.wait (%p1061_p13), %s281_s3, 64  }
  0x32   : > { %914 = vsyncadd (%p1061_p13), %s281_s3, 4294967232  ;;  %s290_s19 = sand.u32 1, %s1051_s11   ;;  %s294_s24 = scalar_lea.vmem [#allocation9], %s1111_s1 }
  0x33   : > { %s291_s20 = scalar_lea.sflag [#allocation10], %s290_s19 }
  0x34   : > { %916 = dma.done.wait (%p1061_p13), %s291_s20, 128  }
  0x35   : > { %918 = vsyncadd (%p1061_p13), %s291_s20, 4294967168  ;;  %s304_s25 = scalar_lea.vmem [#allocation11], %s1111_s1 }
  0x36   : > { %920 = dma.done.wait (%p66_p9), [#allocation13], 64  }
  0x37   : > { %922 = vsyncadd (%p66_p9), [#allocation13], 4294967232  ;;  %vm359_vm0 = vcmask 261120   ;;  %v952_v0 = vmov 0.0   ;;  %v362_v1 = vld [vmem:[%s294_s24] sm:$0xf] }
  0x38   : > { %360 = vst.msk [vmem:[#allocation5] sm:$0xff] %vm359_vm0, %v952_v0  ;;  %v350_v2 = vld [vmem:[%s284_s21] sm:$0xf]  ;;  %v370_v3 = vsel %vm359_vm0, %v362_v1, 0  ;;  %vm354_vm1 = vcmask 257024   ;;  %vm356_vm2 = vcmask 7168  }
  0x39   : > { %v351_v4 = vunpack.c.l.bf16 %v350_v2  ;;  %379 = vmatpush.bf16.xpose.msra.mxu0 %v370_v3  ;;  %v953_v8 = vmov -inf   ;;  %358 = vst.msk [vmem:[#allocation4] sm:$0xff] %vm356_vm2, %v952_v0  ;;  %v363_v9 = vld [vmem:[#allocation12] sm:$0xf]  ;;  %vm386_vm3 = vcmask 64512   ;;  %v954_v15 = vmov 0  }
  0x3a   : > { %357 = vst.msk [vmem:[#allocation3] sm:$0xff] %vm356_vm2, %v953_v8  ;;  %v364_v10 = vunpack.c.l.bf16 %v363_v9  ;;  %730 = vset.pattern.permute.xlu0 %v954_v15  ;;  %731 = vset.pattern.permute.xlu1 %v954_v15  ;;  %v426_v24 = vld [vmem:[%s304_s25] sm:$0xf]  ;;  %vm430_vm5 = vcmask 1043456   ;;  %s637_s26 = sshll.u32 %s1108_s30, 3  ;;  %s641_s27 = sshll.u32 %s941_s18, 3 }
  0x3b   : > { %v352_v5 = vmul.f32 0.17677669, %v351_v4  ;;  %732 = vset.pattern.permute.xlu2 %v954_v15  ;;  %v432_v25 = vsel %vm430_vm5, %v426_v24, 0  ;;  %s475_s11 = scalar_lea.hbm %s1187_s4, %s641_s27  ;;  %s344_s13 = scalar_lea.vmem [#allocation14], %s637_s26 }
  0x3c   : > { %441 = vmatpush.bf16.msra.mxu1 %v432_v25  ;;  %s477_s5 = sshll.u32 %s344_s13, 4  ;;  %s479_s7 = sshll.u32 %s475_s11, 4  ;;  %s478_s5 = int_to_ptr.vmem [resolvable:$true] %s477_s5  ;;  %s480_s7 = int_to_ptr.hbm [resolvable:$true] %s479_s7 }
  0x3d   : > { %v353_v6 = vpack.c.bf16 %v352_v5, %v352_v5  ;;  %s464_s9 = scalar_lea.sflag [#allocation8], %s1108_s30  ;;  %s873_s12 = sshra.s32 %s480_s7, 4  ;;  %s874_s12 = int_to_ptr.hbm [resolvable:$true] %s873_s12 }
  0x3e   : > { %s875_s23 = scalar_lea.hbm %s874_s12, 8  ;;  %s879_s6 = scalar_lea.hbm %s1187_s4, 16 }
  0x3f   : > { %355 = vst.msk [vmem:[#allocation2] sm:$0xf] %vm354_vm1, %v353_v6  ;;  %v418_v38 = vld [vmem:[#allocation5] sm:$0xff]  ;;  %p876_p7 = scmp.ne.s32.totalorder %s874_s12, %s875_s23  ;;  %p880_p10 = scmp.lt.s32.totalorder %s874_s12, %s1187_s4 }
  0x40   : > { %v410_v34 = vld [vmem:[#allocation4] sm:$0xff]  ;;  %p881_p11 = scmp.lt.s32.totalorder %s879_s6, %s875_s23 }
  0x41   : > { %v385_v16 = vld [vmem:[#allocation3] sm:$0xff]  ;;  %p877_p8 = pnand %p876_p7, %p1068_p0 }
  0x42   : > { %p882_p12 = por %p881_p11, %p880_p10 }
  0x43   : > { %p878_p9 = pneg %p877_p8 }
  0x45   : > { %p883_p13 = pnand %p882_p12, %p878_p9 }
  0x46   : > { %v361_v7 = vld [vmem:[#allocation2] sm:$0xf] }
  0x47   : > { %638 = vmatmul.msk.bf16.vlgmr.msra.gmra.mxu0 %vm359_vm0, %v361_v7 }
  0xc4   : > { %v381_v11 = vpop.f32.mrf.mxu0 }
  0xc5   : > { %v382_v12 = vadd.f32 %v381_v11, %v364_v10 }
  0xc7   : > { %v387_v13 = vsel %vm386_vm3, %v382_v12, -inf }
  0xc8   : > { %388 = vmax.xlane.f32.xlu0 %v387_v13 }
  0xcc   : > { %v383_v14 = vpop.f32.mrf.mxu0 }
 0x13b   : > { %v389_v17 = vpop.xlane.xlu0 %388 }
 0x13c   : > { %v390_v18 = vmax.f32 %v385_v16, %v389_v17 }
 0x13e   : > { %v392_v19 = vsub.f32 %v385_v16, %v390_v18  ;;  %449 = vst.msk [vmem:[#allocation3] sm:$0xff] %vm356_vm2, %v390_v18  ;;  %398 = vperm.xlu0 %730, %v390_v18   ;;  %vm391_vm4 = vcmp.eq.f32.partialorder %v390_v18, -inf }
 0x13f   : > { %v404_v20 = vsel %vm391_vm4, 1, %v954_v15 }
 0x140   : > { %v393_v21 = vmul.f32 1.442695, %v392_v19  ;;  %406 = vperm.xlu1 %731, %v404_v20  }
 0x142   : > { %733 = vpow2.f32 %v393_v21 }
 0x148   : > { %v734_v22 = vpop.eup %733 }
 0x149   : > { %v395_v23 = vsel %vm391_vm4, 0.0, %v734_v22 }
 0x14a   : > { %421 = vperm.xlu2 %732, %v395_v23   ;;  %v411_v35 = vmul.f32 %v410_v34, %v395_v23 }
 0x1a4   : > { %v422_v39 = vpop.permute.xlu2 %421 }
 0x1a5   : > { %v424_v40 = vmul.f32 %v422_v39, %v418_v38 }
 0x1b0   : > { %v399_v26 = vpop.permute.xlu0 %398 }
 0x1b1   : > { %v401_v27 = vsub.f32 %v382_v12, %v399_v26 }
 0x1b2   : > { %v407_v29 = vpop.permute.xlu1 %406 }
 0x1b3   : > { %v402_v28 = vmul.f32 1.442695, %v401_v27  ;;  %vm408_vm6 = vcmp.eq.s32.totalorder %v407_v29, 1 }
 0x1b5   : > { %735 = vpow2.f32 %v402_v28 }
 0x1bb   : > { %v736_v30 = vpop.eup %735 }
 0x1bc   : > { %v409_v31 = vsel %vm408_vm6, 0.0, %v736_v30 }
 0x1bd   : > { %v412_v32 = vsel %vm386_vm3, %v409_v31, 0.0  ;;  %v425_v33 = vpack.c.bf16 %v409_v31, %v409_v31 }
 0x1be   : > { %413 = vadd.xlane.f32.xlu1 %v412_v32 }
 0x1bf   : > { %639 = vmatmul.msk.bf16.vlgmr.msra.gmra.mxu1 %vm386_vm3, %v425_v33 }
 0x231   : > { %v414_v36 = vpop.xlane.xlu1 %413 }
 0x232   : > { %v415_v37 = vadd.f32 %v414_v36, %v411_v35 }
 0x234   : > { %417 = vst.msk [vmem:[#allocation4] sm:$0xff] %vm356_vm2, %v415_v37 }
 0x23b   : > { %v453_v41 = vld [vmem:[#allocation4] sm:$0xff] }
 0x23c   : > { %v443_v42 = vpop.f32.mrf.mxu1  ;;  %737 = vrcp.f32 %v453_v41 }
 0x23d   : > { %v447_v43 = vadd.f32 %v443_v42, %v424_v40 }
 0x23f   : > { %448 = vst.msk [vmem:[#allocation5] sm:$0xff] %vm359_vm0, %v447_v43 }
 0x242   : > { %v738_v44 = vpop.eup %737 }
 0x243   : > { %458 = vperm.xlu2 %732, %v738_v44  }
 0x244   : > { %v445_v45 = vpop.f32.mrf.mxu1 }
 0x246   : > { %v455_v46 = vld [vmem:[#allocation5] sm:$0xff] }
 0x29d   : > { %v459_v47 = vpop.permute.xlu2 %458 }
 0x29e   : > { %v461_v48 = vmul.f32 %v459_v47, %v455_v46 }
 0x2a0   : > { %462 = vst.msk [vmem:[%s344_s13] sm:$0xff] %vm359_vm0, %v461_v48 }
 0x2a1   : > { %886 = shalt.err (!%p883_p13)
}
 0x2a2   : > { %654 = dma.vmem_to_hbm [thread:$0]  (%p1068_p0), %s478_s5, 128, %s480_s7, %s464_s9  }
 0x2a3 PF: > { %s1207_s30 = sld [smem:[#allocation20_spill]]  ;;  %s491_s3 = sand.u32 1, %s929_s15  }
 0x2a4   : > { %p671_p4 = pnand %p625_p3, %p1072_p2  ;;  %s492_s21 = scalar_lea.sflag [#allocation8], %s491_s3 }
 0x2a6   : > { %p672_p5 = pneg %p671_p4 }
 0x2a8   : > { %924 = dma.done.wait (%p672_p5), %s492_s21, 128  }
 0x2a9   : > { %926 = vsyncadd (%p672_p5), %s492_s21, 4294967168  ;;  %s24_s20 = sadd.s32 1, %s1207_s30   ;;  %s1208_s19 = sld [smem:[#allocation22_spill]] }
 0x2aa   : > { %p21_p1 = scmp.ge.s32.totalorder %s24_s20, 4   ;;  %s1209_s18 = sld [smem:[#allocation19_spill]] }
 0x2ab   : > { %s1210_s14 = sld [smem:[#allocation21_spill]]  ;;  %s1211_s15 = smov %s933_s16 }
 0x2ac   : > { %s1212_s16 = smov %s937_s17 }
 0x2ad   :  { %23 = sbr.rel (!%p21_p1) target bundleno = 12 (0xc), region = 118 }
 0x2af   : > { %s1213_s17 = smov %s1208_s19 }
 0x2b1   : > { %s1214_s19 = smov %s1210_s14 }
 0x2b2   :  { %498 = vsyncpa [#allocation7], 1 }
 0x2b3   :  { %500 = vsyncpa [#allocation7 + $0x1], 1 }
 0x2b4   :  { %501 = vsyncpa [#allocation10], 1 }
 0x2b5   :  { %503 = vsyncpa [#allocation10 + $0x1], 1 }
 0x2b6   :  { %504 = vsyncpa [#allocation13], 1 }
 0x2b7   :  { %505 = vsyncpa [#allocation8], 1 }
 0x2b8   :  { %507 = vsyncpa [#allocation8 + $0x1], 1 }

</bundles_post_ra>
